<compile_context>
chip_gen: v7x
topology: tpu7x:2x2x1
jax: 0.10.0
libtpu: 0.0.40
codegen_flags: <defaults>
</compile_context>

<pallas_src>
import functools

import jax
import jax.numpy as jnp
from jax.experimental import pallas as pl
from jax.experimental.pallas import tpu as pltpu

H = 768            # XLNet-base hidden size (fc1 input)
D1, D2 = 256, 64   # fc1 / fc2 widths
OUT_LANES = 128    # lane-dense output slab; column 0 carries the probability


def _round_up(x, m):
    return ((x + m - 1) // m) * m


def _head_kernel(h_ref, w1_ref, b1_ref, w2_ref, b2_ref, w3_ref, b3_ref,
                 out_ref, acc_ref, *, inv_seq_len):
    """Seq-sum accumulation + fused MLP head epilogue on the last seq step."""
    s = pl.program_id(1)

    @pl.when(s == 0)
    def _():
        acc_ref[...] = jnp.zeros_like(acc_ref)

    # bf16 hidden tile (TB, TS, H) streamed from HBM; accumulate the seq-sum
    # in f32 so long sequences don't lose precision.
    acc_ref[...] += jnp.sum(h_ref[...].astype(jnp.float32), axis=1)

    @pl.when(s == pl.num_programs(1) - 1)
    def _():
        # Fold the 1/S of the mean into the epilogue (pooling loop is add-only).
        pooled = acc_ref[...] * inv_seq_len                        # (TB, H) f32

        # fc1 (768 -> 256): bf16 inputs on the MXU, f32 accumulate.
        x = jnp.dot(pooled.astype(jnp.bfloat16), w1_ref[...],
                    preferred_element_type=jnp.float32) + b1_ref[...]
        x = jnp.maximum(x, 0.0)                                    # relu

        # fc2 (256 -> 64): f32.
        x = jnp.dot(x, w2_ref[...],
                    preferred_element_type=jnp.float32) + b2_ref[...]
        x = jnp.maximum(x, 0.0)                                    # relu

        # output (64 -> 1): VPU lane reduction instead of an N=1 MXU matmul.
        logit = jnp.sum(x * w3_ref[...], axis=-1, keepdims=True) + b3_ref[...]

        # sigmoid = 1 / (1 + exp(-x)); exp + approx reciprocal go to the EUP.
        prob = pl.reciprocal(1.0 + jnp.exp(-logit), approx=True)   # (TB, 1)

        # Lane-dense store: broadcast across 128 lanes, slice to (B, 1) outside.
        out_ref[...] = jnp.broadcast_to(prob, out_ref.shape)


def assessment_head(hidden_bf16, params, *, seq_len):
    """hidden_bf16: (B, S, H) bf16 -> (B, 1) f32 probabilities."""
    B, S, _ = hidden_bf16.shape

    # Tile sizes: TB up to the MXU M-height, TS capped so the double-buffered
    # bf16 hidden tile (2 * TB*TS*H*2B = 24 MiB at 128x64) fits v7x's 64 MiB VMEM.
    TB = min(128, _round_up(B, 8))
    TS = min(64, _round_up(S, 8))
    B_pad = _round_up(B, TB)
    S_pad = _round_up(S, TS)
    if (B_pad, S_pad) != (B, S):
        # Zero padding: does not change the sequence sum; we divide by the
        # true seq_len, and padded batch rows are sliced off below.
        hidden_bf16 = jnp.pad(
            hidden_bf16, ((0, B_pad - B), (0, S_pad - S), (0, 0)))

    grid = (B_pad // TB, S_pad // TS)
    kernel = functools.partial(_head_kernel, inv_seq_len=1.0 / float(seq_len))

    out = pl.pallas_call(
        kernel,
        out_shape=jax.ShapeDtypeStruct((B_pad, OUT_LANES), jnp.float32),
        grid_spec=pltpu.PrefetchScalarGridSpec(
            num_scalar_prefetch=0,
            grid=grid,
            in_specs=[
                pl.BlockSpec((TB, TS, H), lambda b, s: (b, s, 0)),  # hidden
                pl.BlockSpec((H, D1), lambda b, s: (0, 0)),         # w1 (resident)
                pl.BlockSpec((1, D1), lambda b, s: (0, 0)),         # b1
                pl.BlockSpec((D1, D2), lambda b, s: (0, 0)),        # w2
                pl.BlockSpec((1, D2), lambda b, s: (0, 0)),         # b2
                pl.BlockSpec((1, D2), lambda b, s: (0, 0)),         # w3 (as a row)
                pl.BlockSpec((1, 1), lambda b, s: (0, 0)),          # b3
            ],
            out_specs=pl.BlockSpec((TB, OUT_LANES), lambda b, s: (b, 0)),
            scratch_shapes=[pltpu.VMEM((TB, H), jnp.float32)],      # f32 seq-sum
        ),
        compiler_params=pltpu.CompilerParams(
            dimension_semantics=("parallel", "arbitrary"),
            vmem_limit_bytes=48 * 1024 * 1024,
        ),
    )(hidden_bf16, params["w1"], params["b1"], params["w2"], params["b2"],
      params["w3_row"], params["b3"])

    return out[:B, :1]


def synthetic_xlnet_backbone(input_ids, attention_mask, tok_emb, pos_emb):
    # TODO(synk): the pretrained 12-layer XLNet relative-attention backbone
    # (XLNetModel.from_pretrained) has no clean in-script Pallas equivalent;
    # a deterministic token+position embedding stand-in produces
    # last_hidden_state of shape (B, S, 768).  attention_mask only affects the
    # backbone's attention internals and is therefore unused by the stand-in.
    del attention_mask
    S = input_ids.shape[1]
    h = tok_emb[input_ids] + pos_emb[None, :S, :]
    return h.astype(jnp.bfloat16)          # bf16: halves HBM traffic for the head


def xlnet_answer_assessment_forward(input_ids, attention_mask, backbone, params):
    hidden = synthetic_xlnet_backbone(
        input_ids, attention_mask, backbone["tok_emb"], backbone["pos_emb"])
    return assessment_head(hidden, params, seq_len=input_ids.shape[1])


if __name__ == "__main__":
    B, S, V = 2, 8, 128   # small batch / seq / vocab for the synthetic run

    key = jax.random.PRNGKey(0)
    kE, kP, k1, kb1, k2, kb2, k3, kb3, kid = jax.random.split(key, 9)

    backbone = {
        "tok_emb": 0.02 * jax.random.normal(kE, (V, H), jnp.float32),
        "pos_emb": 0.02 * jax.random.normal(kP, (S, H), jnp.float32),
    }
    params = {
        "w1": (0.02 * jax.random.normal(k1, (H, D1), jnp.float32)
               ).astype(jnp.bfloat16),                               # bf16 MXU input
        "b1": 0.02 * jax.random.normal(kb1, (1, D1), jnp.float32),
        "w2": 0.02 * jax.random.normal(k2, (D1, D2), jnp.float32),
        "b2": 0.02 * jax.random.normal(kb2, (1, D2), jnp.float32),
        "w3_row": 0.02 * jax.random.normal(k3, (1, D2), jnp.float32),  # (1, 64) row
        "b3": 0.02 * jax.random.normal(kb3, (1, 1), jnp.float32),
    }

    input_ids = jax.random.randint(kid, (B, S), 0, V, dtype=jnp.int32)
    attention_mask = jnp.ones((B, S), jnp.float32)

    out = xlnet_answer_assessment_forward(input_ids, attention_mask,
                                          backbone, params)
    out = jax.block_until_ready(out)
    assert out.shape == (B, 1)

    # Pure-JAX reference mirroring the kernel's numerics (bf16 hidden / w1,
    # f32 accumulation, exact sigmoid).
    hidden = synthetic_xlnet_backbone(input_ids, attention_mask,
                                      backbone["tok_emb"], backbone["pos_emb"])
    pooled = jnp.sum(hidden.astype(jnp.float32), axis=1) / S
    x = jax.nn.relu(jnp.dot(pooled.astype(jnp.bfloat16), params["w1"],
                            preferred_element_type=jnp.float32) + params["b1"])
    x = jax.nn.relu(jnp.dot(x, params["w2"],
                            preferred_element_type=jnp.float32) + params["b2"])
    logit = jnp.sum(x * params["w3_row"], axis=-1, keepdims=True) + params["b3"]
    ref = jax.nn.sigmoid(logit)

    assert jnp.allclose(out, ref, atol=5e-3), (out, ref)

    print("KERNEL_OK")
</pallas_src>

<mosaic_0001>
module attributes {stable_mosaic.version = 11 : i64} {
  func.func @_head_kernel(%arg0: i32, %arg1: i32, %arg2: memref<8x8x768xbf16, #tpu.memory_space<vmem>>, %arg3: memref<768x256xbf16, #tpu.memory_space<vmem>>, %arg4: memref<1x256xf32, #tpu.memory_space<vmem>>, %arg5: memref<256x64xf32, #tpu.memory_space<vmem>>, %arg6: memref<1x64xf32, #tpu.memory_space<vmem>>, %arg7: memref<1x64xf32, #tpu.memory_space<vmem>>, %arg8: memref<1x1xf32, #tpu.memory_space<vmem>>, %arg9: memref<8x128xf32, #tpu.memory_space<vmem>>, %arg10: memref<8x768xf32, #tpu.memory_space<vmem>>) attributes {dimension_semantics = [#tpu.dimension_semantics<parallel>, #tpu.dimension_semantics<arbitrary>], iteration_bounds = array<i64: 1, 1>, scalar_prefetch = 0 : i64, scratch_operands = 1 : i64, tpu.core_type = #tpu.core_type<tc>, window_params = [{transform_indices = @transform_0, window_bounds = array<i64: 8, 8, 768>}, {pipeline_mode = #tpu.pipeline_mode<synchronous>, transform_indices = @transform_1, window_bounds = array<i64: 768, 256>}, {pipeline_mode = #tpu.pipeline_mode<synchronous>, transform_indices = @transform_2, window_bounds = array<i64: 1, 256>}, {pipeline_mode = #tpu.pipeline_mode<synchronous>, transform_indices = @transform_3, window_bounds = array<i64: 256, 64>}, {pipeline_mode = #tpu.pipeline_mode<synchronous>, transform_indices = @transform_4, window_bounds = array<i64: 1, 64>}, {pipeline_mode = #tpu.pipeline_mode<synchronous>, transform_indices = @transform_5, window_bounds = array<i64: 1, 64>}, {pipeline_mode = #tpu.pipeline_mode<synchronous>, transform_indices = @transform_6, window_bounds = array<i64: 1, 1>}, {transform_indices = @transform_7, window_bounds = array<i64: 8, 128>}]} {
    %c0_i32 = arith.constant 0 : i32
    %0 = arith.cmpi eq, %arg1, %c0_i32 : i32
    %1 = arith.extui %0 : i1 to i32
    %c0_i32_0 = arith.constant 0 : i32
    %2 = arith.cmpi ne, %1, %c0_i32_0 : i32
    scf.if %2 {
      %cst_9 = arith.constant 0.000000e+00 : f32
      %12 = vector.broadcast %cst_9 : f32 to vector<8x768xf32>
      %c0_10 = arith.constant 0 : index
      %c0_11 = arith.constant 0 : index
      %13 = vector.load %arg10[%c0_10, %c0_11] : memref<8x768xf32, #tpu.memory_space<vmem>>, vector<8x768xf32>
      tpu.vector_store %arg10[%c0_10, %c0_11], %12 {strides = array<i32>} : memref<8x768xf32, #tpu.memory_space<vmem>>, vector<8x768xf32>,
    } else {
    }
    %c0 = arith.constant 0 : index
    %c0_1 = arith.constant 0 : index
    %3 = vector.load %arg10[%c0, %c0_1] : memref<8x768xf32, #tpu.memory_space<vmem>>, vector<8x768xf32>
    %c0_2 = arith.constant 0 : index
    %c0_3 = arith.constant 0 : index
    %c0_4 = arith.constant 0 : index
    %4 = vector.load %arg2[%c0_2, %c0_3, %c0_4] : memref<8x8x768xbf16, #tpu.memory_space<vmem>>, vector<8x8x768xbf16>
    %5 = arith.extf %4 : vector<8x8x768xbf16> to vector<8x8x768xf32>
    %cst = arith.constant dense<0.000000e+00> : vector<8x768xf32>
    %6 = vector.multi_reduction <add>, %5, %cst [1] : vector<8x8x768xf32> to vector<8x768xf32>
    %7 = arith.addf %3, %6 : vector<8x768xf32>
    %c0_5 = arith.constant 0 : index
    %c0_6 = arith.constant 0 : index
    %8 = vector.load %arg10[%c0_5, %c0_6] : memref<8x768xf32, #tpu.memory_space<vmem>>, vector<8x768xf32>
    tpu.vector_store %arg10[%c0_5, %c0_6], %7 {strides = array<i32>} : memref<8x768xf32, #tpu.memory_space<vmem>>, vector<8x768xf32>,
    %c0_i32_7 = arith.constant 0 : i32
    %9 = arith.cmpi eq, %arg1, %c0_i32_7 : i32
    %10 = arith.extui %9 : i1 to i32
    %c0_i32_8 = arith.constant 0 : i32
    %11 = arith.cmpi ne, %10, %c0_i32_8 : i32
    scf.if %11 {
      %c0_9 = arith.constant 0 : index
      %c0_10 = arith.constant 0 : index
      %12 = vector.load %arg10[%c0_9, %c0_10] : memref<8x768xf32, #tpu.memory_space<vmem>>, vector<8x768xf32>
      %cst_11 = arith.constant 1.250000e-01 : f32
      %13 = vector.broadcast %cst_11 : f32 to vector<8x768xf32>
      %14 = arith.mulf %12, %13 : vector<8x768xf32>
      %15 = arith.truncf %14 : vector<8x768xf32> to vector<8x768xbf16>
      %c0_12 = arith.constant 0 : index
      %c0_13 = arith.constant 0 : index
      %16 = vector.load %arg3[%c0_12, %c0_13] : memref<768x256xbf16, #tpu.memory_space<vmem>>, vector<768x256xbf16>
      %cst_14 = arith.constant dense<0.000000e+00> : vector<8x256xf32>
      %17 = tpu.matmul %15, %16, %cst_14 {dimension_numbers = #tpu.dot_dimension_numbers<[1], [0], [0], [1], [0, 0, 1, 1], [], []>} : vector<8x768xbf16>, vector<768x256xbf16>, vector<8x256xf32> -> vector<8x256xf32>
      %c0_15 = arith.constant 0 : index
      %c0_16 = arith.constant 0 : index
      %18 = vector.load %arg4[%c0_15, %c0_16] : memref<1x256xf32, #tpu.memory_space<vmem>>, vector<1x256xf32>
      %19 = vector.broadcast %18 : vector<1x256xf32> to vector<8x256xf32>
      %20 = arith.addf %17, %19 : vector<8x256xf32>
      %cst_17 = arith.constant 0.000000e+00 : f32
      %21 = vector.broadcast %cst_17 : f32 to vector<8x256xf32>
      %22 = arith.maximumf %20, %21 : vector<8x256xf32>
      %c0_18 = arith.constant 0 : index
      %c0_19 = arith.constant 0 : index
      %23 = vector.load %arg5[%c0_18, %c0_19] : memref<256x64xf32, #tpu.memory_space<vmem>>, vector<256x64xf32>
      %cst_20 = arith.constant dense<0.000000e+00> : vector<8x64xf32>
      %24 = tpu.matmul %22, %23, %cst_20 {dimension_numbers = #tpu.dot_dimension_numbers<[1], [0], [0], [1], [0, 0, 1, 1], [], []>} : vector<8x256xf32>, vector<256x64xf32>, vector<8x64xf32> -> vector<8x64xf32>
      %c0_21 = arith.constant 0 : index
      %c0_22 = arith.constant 0 : index
      %25 = vector.load %arg6[%c0_21, %c0_22] : memref<1x64xf32, #tpu.memory_space<vmem>>, vector<1x64xf32>
      %26 = vector.broadcast %25 : vector<1x64xf32> to vector<8x64xf32>
      %27 = arith.addf %24, %26 : vector<8x64xf32>
      %cst_23 = arith.constant 0.000000e+00 : f32
      %28 = vector.broadcast %cst_23 : f32 to vector<8x64xf32>
      %29 = arith.maximumf %27, %28 : vector<8x64xf32>
      %c0_24 = arith.constant 0 : index
      %c0_25 = arith.constant 0 : index
      %30 = vector.load %arg7[%c0_24, %c0_25] : memref<1x64xf32, #tpu.memory_space<vmem>>, vector<1x64xf32>
      %31 = vector.broadcast %30 : vector<1x64xf32> to vector<8x64xf32>
      %32 = arith.mulf %29, %31 : vector<8x64xf32>
      %cst_26 = arith.constant dense<0.000000e+00> : vector<8xf32>
      %33 = vector.multi_reduction <add>, %32, %cst_26 [1] : vector<8x64xf32> to vector<8xf32>
      %34 = vector.shape_cast %33 : vector<8xf32> to vector<8x1xf32>
      %c0_27 = arith.constant 0 : index
      %c0_28 = arith.constant 0 : index
      %35 = vector.load %arg8[%c0_27, %c0_28] : memref<1x1xf32, #tpu.memory_space<vmem>>, vector<1x1xf32>
      %36 = vector.broadcast %35 : vector<1x1xf32> to vector<8x1xf32>
      %37 = arith.addf %34, %36 : vector<8x1xf32>
      %cst_29 = arith.constant 0.000000e+00 : f32
      %38 = vector.broadcast %cst_29 : f32 to vector<8x1xf32>
      %39 = arith.subf %38, %37 : vector<8x1xf32>
      %40 = math.exp %39 : vector<8x1xf32>
      %cst_30 = arith.constant 1.000000e+00 : f32
      %41 = vector.broadcast %cst_30 : f32 to vector<8x1xf32>
      %42 = arith.addf %41, %40 : vector<8x1xf32>
      %43 = tpu.reciprocal %42 {approx = true} : vector<8x1xf32> -> vector<8x1xf32>
      %44 = vector.shape_cast %43 : vector<8x1xf32> to vector<8x1xf32>
      %45 = vector.broadcast %44 : vector<8x1xf32> to vector<8x128xf32>
      %c0_31 = arith.constant 0 : index
      %c0_32 = arith.constant 0 : index
      %46 = vector.load %arg9[%c0_31, %c0_32] : memref<8x128xf32, #tpu.memory_space<vmem>>, vector<8x128xf32>
      tpu.vector_store %arg9[%c0_31, %c0_32], %45 {strides = array<i32>} : memref<8x128xf32, #tpu.memory_space<vmem>>, vector<8x128xf32>,
    } else {
    }
    return
  }
  func.func @transform_0(%arg0: i32, %arg1: i32) -> (i32, i32, i32) {
    %c0_i32 = arith.constant 0 : i32
    %c0_i32_0 = arith.constant 0 : i32
    return %arg0, %arg1, %c0_i32 : i32, i32, i32
  }
  func.func @transform_1(%arg0: i32, %arg1: i32) -> (i32, i32) {
    %c0_i32 = arith.constant 0 : i32
    %c0_i32_0 = arith.constant 0 : i32
    %c0_i32_1 = arith.constant 0 : i32
    return %c0_i32, %c0_i32_0 : i32, i32
  }
  func.func @transform_2(%arg0: i32, %arg1: i32) -> (i32, i32) {
    %c0_i32 = arith.constant 0 : i32
    %c0_i32_0 = arith.constant 0 : i32
    %c0_i32_1 = arith.constant 0 : i32
    return %c0_i32, %c0_i32_0 : i32, i32
  }
  func.func @transform_3(%arg0: i32, %arg1: i32) -> (i32, i32) {
    %c0_i32 = arith.constant 0 : i32
    %c0_i32_0 = arith.constant 0 : i32
    %c0_i32_1 = arith.constant 0 : i32
    return %c0_i32, %c0_i32_0 : i32, i32
  }
  func.func @transform_4(%arg0: i32, %arg1: i32) -> (i32, i32) {
    %c0_i32 = arith.constant 0 : i32
    %c0_i32_0 = arith.constant 0 : i32
    %c0_i32_1 = arith.constant 0 : i32
    return %c0_i32, %c0_i32_0 : i32, i32
  }
  func.func @transform_5(%arg0: i32, %arg1: i32) -> (i32, i32) {
    %c0_i32 = arith.constant 0 : i32
    %c0_i32_0 = arith.constant 0 : i32
    %c0_i32_1 = arith.constant 0 : i32
    return %c0_i32, %c0_i32_0 : i32, i32
  }
  func.func @transform_6(%arg0: i32, %arg1: i32) -> (i32, i32) {
    %c0_i32 = arith.constant 0 : i32
    %c0_i32_0 = arith.constant 0 : i32
    %c0_i32_1 = arith.constant 0 : i32
    return %c0_i32, %c0_i32_0 : i32, i32
  }
  func.func @transform_7(%arg0: i32, %arg1: i32) -> (i32, i32) {
    %c0_i32 = arith.constant 0 : i32
    %c0_i32_0 = arith.constant 0 : i32
    return %arg0, %c0_i32 : i32, i32
  }
}

</mosaic_0001>

<bundles_post_ra>
// kernel: tpu_custom_call.1
= control target key start
LH: loop header
LB: loop body
LE: loop exit
PB: predicated region body
PF: predicated region fallthrough
CT: control target
= control target key end

     0   :  { %s2283_s0 = inlined_call_operand.vmem [shape: bf16[8,8,768], index: 0, kind: input, shape index: {}]   ;;  %s2284_s1 = inlined_call_operand.hbm [shape: bf16[768,256], index: 1, kind: input, shape index: {}]   ;;  %s2285_s2 = inlined_call_operand.vmem [shape: f32[1,256], index: 2, kind: input, shape index: {}]   ;;  %s2286_s3 = inlined_call_operand.vmem [shape: f32[256,64], index: 3, kind: input, shape index: {}]   ;;  %s2287_s4 = inlined_call_operand.vmem [shape: f32[1,64], index: 4, kind: input, shape index: {}]   ;;  %s2288_s5 = inlined_call_operand.vmem [shape: f32[1,64], index: 5, kind: input, shape index: {}]   ;;  %s2289_s6 = inlined_call_operand.<no memory space> [shape: f32[1,1], index: 6, kind: input, shape index: {}]   ;;  %s2290_s7 = inlined_call_operand.hbm [shape: f32[8,128], index: 7, kind: output, shape index: {}]  }
   0x1   :  { %v12_v0 = vstv %s2289_s6 }
   0x2   :  { %13 = vst [vmem:[#allocation3] sm:$0x1] %v12_v0 }
   0x3   :  { %14 = vsyncpa [#allocation5], 0 }
   0x4   :  { %15 = vsyncpa [#allocation6], 0  ;;  %s1800_s26 = smov [#allocation4]   ;;  %s1752_s30 = scalar_lea.hbm %s2284_s1, 12288 }
   0x5   :  { %s23_s27 = sshll.u32 %s1800_s26, 4  ;;  %p1753_p0 = scmp.ne.s32.totalorder %s2284_s1, %s1752_s30  ;;  %s24_s27 = int_to_ptr.vmem [resolvable:$true] %s23_s27 }
   0x6   :  { %p1756_p1 = scmp.lt.u32.totalorder %s1752_s30, %s2284_s1 }
   0x8   :  { %p1758_p2 = pnand %p1756_p1, %p1753_p0 }
   0xa   :  { %1761 = shalt.err (!%p1758_p2)
}
   0xb   :  { %s1762_s6 = scalar_lea.vmem %s24_s27, 12288  ;;  %p1767_p4 = scmp.lt.s32.totalorder %s24_s27, %s24_s27 }
   0xc   :  { %p1763_p3 = scmp.ne.s32.totalorder %s24_s27, %s1762_s6  ;;  %p1768_p5 = scmp.lt.s32.totalorder %s1762_s6, %s1762_s6 }
   0xe   :  { %p1769_p6 = por %p1768_p5, %p1767_p4 }
  0x10   :  { %p1770_p7 = pnand %p1769_p6, %p1763_p3 }
  0x12   :  { %1773 = shalt.err (!%p1770_p7)
}
  0x13   :  { %s1801_s12 = smov 128   ;;  %s1802_s13 = smov 8  }
  0x14   :  { %29 = dma.hbm_to_vmem [thread:$0]  %s2284_s1, 12288, %s24_s27, [#allocation5], %s1801_s12, %s1801_s12, %s1802_s13  }
  0x15   :  { %1796 = dma.done.wait [#allocation5], 12288  }
  0x16   :  { %1797 = vsyncadd [#allocation5], 4294955008  ;;  %v1604_v1 = vld [vmem:[#allocation4 + $0x104] ss:$8 sps:$4 sm:$0xff]   ;;  %v1606_v2 = vld [vmem:[#allocation4 + $0x100] ss:$8 sps:$4 sm:$0xff]  }
  0x17   :  { %1184 = vmatprep.subr.bf16.mxu0 %v1604_v1  ;;  %v1607_v3 = vld [vmem:[#allocation4 + $0x114] ss:$8 sps:$4 sm:$0xff]   ;;  %v1609_v4 = vld [vmem:[#allocation4 + $0x110] ss:$8 sps:$4 sm:$0xff]   ;;  %v1610_v5 = vld [vmem:[#allocation4 + $0x124] ss:$8 sps:$4 sm:$0xff]  }
  0x18   :  { %1185 = vmatpush1.bf16.msra.mxu0 %v1606_v2  ;;  %v1612_v6 = vld [vmem:[#allocation4 + $0x120] ss:$8 sps:$4 sm:$0xff]   ;;  %v1613_v7 = vld [vmem:[#allocation4 + $0x134] ss:$8 sps:$4 sm:$0xff]   ;;  %v1615_v8 = vld [vmem:[#allocation4 + $0x130] ss:$8 sps:$4 sm:$0xff]  }
  0x19   :  { %1186 = vmatprep.subr.bf16.mxu0 %v1607_v3  ;;  %v1616_v9 = vld [vmem:[#allocation4 + $0x144] ss:$8 sps:$4 sm:$0xff]   ;;  %v1618_v10 = vld [vmem:[#allocation4 + $0x140] ss:$8 sps:$4 sm:$0xff]   ;;  %v1619_v11 = vld [vmem:[#allocation4 + $0x154] ss:$8 sps:$4 sm:$0xff]  }
  0x1a   :  { %v1621_v12 = vld [vmem:[#allocation4 + $0x150] ss:$8 sps:$4 sm:$0xff]   ;;  %v1622_v13 = vld [vmem:[#allocation4 + $0x164] ss:$8 sps:$4 sm:$0xff]   ;;  %v1651_v15 = vld [vmem:[#allocation4] ss:$8 sps:$4 sm:$0xff]  }
  0x1b   :  { %v1649_v14 = vld [vmem:[#allocation4 + $0x4] ss:$8 sps:$4 sm:$0xff]   ;;  %v1624_v16 = vld [vmem:[#allocation4 + $0x160] ss:$8 sps:$4 sm:$0xff]   ;;  %v1625_v17 = vld [vmem:[#allocation4 + $0x174] ss:$8 sps:$4 sm:$0xff]  }
  0x1c   :  { %1187 = vmatpush1.bf16.msra.mxu0 %v1609_v4  ;;  %1143 = vmatprep.subr.bf16.mxu1 %v1649_v14  ;;  %v1655_v18 = vld [vmem:[#allocation4 + $0x14] ss:$8 sps:$4 sm:$0xff]   ;;  %v1657_v19 = vld [vmem:[#allocation4 + $0x10] ss:$8 sps:$4 sm:$0xff]   ;;  %v1863_v20 = vld [vmem:[%s2283_s0 + $0x8] sm:$0xff]  ;;  %vm467_vm0 = vcmask 1041409  }
  0x1d   :  { %1188 = vmatprep.subr.bf16.mxu0 %v1610_v5  ;;  %1144 = vmatpush1.bf16.msra.mxu1 %v1651_v15  ;;  %v1868_v21 = vld [vmem:[%s2283_s0 + $0x20] sm:$0xff]  ;;  %v1873_v22 = vld [vmem:[%s2283_s0 + $0x38] sm:$0xff]  ;;  %v1878_v23 = vld [vmem:[%s2283_s0 + $0x50] sm:$0xff]  ;;  %v85_v26 = vunpack.c.l.bf16 %v1863_v20  ;;  %v86_v27 = vunpack.c.h.bf16 %v1863_v20  ;;  %vm469_vm1 = vcmask 1042434   ;;  %vm471_vm2 = vcmask 1043459  }
  0x1e   :  { %1145 = vmatprep.subr.bf16.mxu1 %v1655_v18  ;;  %v1883_v24 = vld [vmem:[%s2283_s0 + $0x68] sm:$0xff]  ;;  %v1888_v25 = vld [vmem:[%s2283_s0 + $0x80] sm:$0xff]  ;;  %v91_v28 = vunpack.c.l.bf16 %v1868_v21  ;;  %v92_v29 = vunpack.c.h.bf16 %v1868_v21  ;;  %v1897_v30 = vld [vmem:[%s2283_s0 + $0x98] sm:$0xff]  ;;  %v97_v32 = vunpack.c.l.bf16 %v1873_v22  ;;  %v98_v33 = vunpack.c.h.bf16 %v1873_v22 }
  0x1f   :  { %v1902_v31 = vld [vmem:[%s2283_s0 + $0xb0] sm:$0xff]  ;;  %v103_v34 = vunpack.c.l.bf16 %v1878_v23  ;;  %v104_v35 = vunpack.c.h.bf16 %v1878_v23  ;;  %v109_v38 = vunpack.c.l.bf16 %v1883_v24  ;;  %v110_v39 = vunpack.c.h.bf16 %v1883_v24  ;;  %v1663_v51 = vld [vmem:[#allocation4 + $0x20] ss:$8 sps:$4 sm:$0xff]  }
  0x20   :  { %1189 = vmatpush1.bf16.msra.mxu0 %v1612_v6  ;;  %v1627_v36 = vld [vmem:[#allocation4 + $0x170] ss:$8 sps:$4 sm:$0xff]   ;;  %v1628_v37 = vld [vmem:[#allocation4 + $0x184] ss:$8 sps:$4 sm:$0xff]   ;;  %v115_v40 = vunpack.c.l.bf16 %v1888_v25  ;;  %v116_v41 = vunpack.c.h.bf16 %v1888_v25  ;;  %v121_v42 = vunpack.c.l.bf16 %v1897_v30  ;;  %v122_v43 = vunpack.c.h.bf16 %v1897_v30  ;;  %v1630_v56 = vld [vmem:[#allocation4 + $0x180] ss:$8 sps:$4 sm:$0xff]  }
  0x21   :  { %1190 = vmatprep.subr.bf16.mxu0 %v1613_v7  ;;  %1146 = vmatpush1.bf16.msra.mxu1 %v1657_v19  ;;  %v127_v44 = vunpack.c.l.bf16 %v1902_v31  ;;  %v128_v45 = vunpack.c.h.bf16 %v1902_v31  ;;  %v1661_v46 = vld [vmem:[#allocation4 + $0x24] ss:$8 sps:$4 sm:$0xff]   ;;  %v149_v47 = vrot.slane %v86_v27, 4  ;;  %v185_v48 = vrot.slane %v92_v29, 4  ;;  %v1631_v57 = vld [vmem:[#allocation4 + $0x194] ss:$8 sps:$4 sm:$0xff]  }
  0x22   :  { %v221_v49 = vrot.slane %v98_v33, 4  ;;  %v257_v50 = vrot.slane %v104_v35, 4  ;;  %v293_v52 = vrot.slane %v110_v39, 4  ;;  %v329_v53 = vrot.slane %v116_v41, 4  ;;  %1147 = vmatprep.subr.bf16.mxu1 %v1661_v46  ;;  %v1667_v2 = vld [vmem:[#allocation4 + $0x34] ss:$8 sps:$4 sm:$0xff]  }
  0x23   :  { %v365_v54 = vrot.slane %v122_v43, 4  ;;  %v401_v55 = vrot.slane %v128_v45, 4  ;;  %v150_v58 = vadd.f32 %v149_v47, %v86_v27  ;;  %v186_v59 = vadd.f32 %v185_v48, %v92_v29  ;;  %v1669_v3 = vld [vmem:[#allocation4 + $0x30] ss:$8 sps:$4 sm:$0xff]   ;;  %v1636_v48 = vld [vmem:[#allocation4 + $0x1a0] ss:$8 sps:$4 sm:$0xff]  }
  0x24   :  { %1191 = vmatpush1.bf16.msra.mxu0 %v1615_v8  ;;  %v222_v60 = vadd.f32 %v221_v49, %v98_v33  ;;  %v258_v61 = vadd.f32 %v257_v50, %v104_v35  ;;  %v294_v62 = vadd.f32 %v293_v52, %v110_v39  ;;  %v330_v63 = vadd.f32 %v329_v53, %v116_v41  ;;  %v1633_v8 = vld [vmem:[#allocation4 + $0x190] ss:$8 sps:$4 sm:$0xff]   ;;  %v1673_v33 = vld [vmem:[#allocation4 + $0x44] ss:$8 sps:$4 sm:$0xff]   ;;  %v1675_v35 = vld [vmem:[#allocation4 + $0x40] ss:$8 sps:$4 sm:$0xff]  }
  0x25   :  { %1192 = vmatprep.subr.bf16.mxu0 %v1616_v9  ;;  %v366_v0 = vadd.f32 %v365_v54, %v122_v43  ;;  %v402_v1 = vadd.f32 %v401_v55, %v128_v45  ;;  %v151_v4 = vrot.slane %v150_v58, 2  ;;  %v187_v5 = vrot.slane %v186_v59, 2  ;;  %1148 = vmatpush1.bf16.msra.mxu1 %v1663_v51  ;;  %v1679_v53 = vld [vmem:[#allocation4 + $0x54] ss:$8 sps:$4 sm:$0xff]   ;;  %v1642_v24 = vld [vmem:[#allocation4 + $0x1c0] ss:$8 sps:$4 sm:$0xff]  }
  0x26   :  { %v223_v6 = vrot.slane %v222_v60, 2  ;;  %v259_v7 = vrot.slane %v258_v61, 2  ;;  %vm473_vm3 = vcmask 1044484   ;;  %v295_v9 = vrot.slane %v294_v62, 2  ;;  %1149 = vmatprep.subr.bf16.mxu1 %v1667_v2  ;;  %v1637_v54 = vld [vmem:[#allocation4 + $0x1b4] ss:$8 sps:$4 sm:$0xff]  }
  0x27   :  { %vm475_vm4 = vcmask 1045509   ;;  %v152_v14 = vadd.f32 %v151_v4, %v150_v58  ;;  %v188_v15 = vadd.f32 %v187_v5, %v186_v59  ;;  %vm477_vm5 = vcmask 1046534   ;;  %v1639_v4 = vld [vmem:[#allocation4 + $0x1b0] ss:$8 sps:$4 sm:$0xff]   ;;  %v1691_v23 = vld [vmem:[#allocation4 + $0x74] ss:$8 sps:$4 sm:$0xff]  }
  0x28   :  { %1193 = vmatpush1.bf16.msra.mxu0 %v1618_v10  ;;  %v331_v10 = vrot.slane %v330_v63, 2  ;;  %v296_v18 = vadd.f32 %v295_v9, %v294_v62  ;;  %vm479_vm6 = vcmask 1047559   ;;  %v215_v62 = vrot.slane %v97_v32, 4  ;;  %v1685_v9 = vld [vmem:[#allocation4 + $0x64] ss:$8 sps:$4 sm:$0xff]  }
  0x29   :  { %1194 = vmatprep.subr.bf16.mxu0 %v1619_v11  ;;  %v367_v11 = vrot.slane %v366_v0, 2  ;;  %1150 = vmatpush1.bf16.msra.mxu1 %v1669_v3  ;;  %v287_v2 = vrot.slane %v109_v38, 4  ;;  %v323_v3 = vrot.slane %v115_v40, 4  ;;  %vm1386_vm7 = vcmask 523264  }
  0x2a   :  { %v332_v19 = vadd.f32 %v331_v10, %v330_v63  ;;  %v297_v43 = vrot.slane %v296_v18, 1  ;;  %1151 = vmatprep.subr.bf16.mxu1 %v1673_v33  ;;  %v1681_v63 = vld [vmem:[#allocation4 + $0x50] ss:$8 sps:$4 sm:$0xff]   ;;  %v1640_v10 = vld [vmem:[#allocation4 + $0x1c4] ss:$8 sps:$4 sm:$0xff]  }
  0x2b   :  { %v368_v27 = vadd.f32 %v367_v11, %v366_v0  ;;  %v324_v20 = vadd.f32 %v323_v3, %v115_v40 }
  0x2c   :  { %1195 = vmatpush1.bf16.msra.mxu0 %v1621_v12  ;;  %v403_v12 = vrot.slane %v402_v1, 2  ;;  %v333_v45 = vrot.slane %v332_v19, 1  ;;  %v298_v55 = vadd.f32 %v297_v43, %v296_v18  ;;  %v1697_v43 = vld [vmem:[#allocation4 + $0x84] ss:$8 sps:$4 sm:$0xff]  }
  0x2d   :  { %1196 = vmatprep.subr.bf16.mxu0 %v1622_v13  ;;  %v1634_v13 = vld [vmem:[#allocation4 + $0x1a4] ss:$8 sps:$4 sm:$0xff]   ;;  %v369_v46 = vrot.slane %v368_v27, 1  ;;  %1152 = vmatpush1.bf16.msra.mxu1 %v1675_v35  ;;  %v1693_v35 = vld [vmem:[#allocation4 + $0x70] ss:$8 sps:$4 sm:$0xff]  }
  0x2e   :  { %v404_v29 = vadd.f32 %v403_v12, %v402_v1  ;;  %v251_v1 = vrot.slane %v103_v34, 4  ;;  %1153 = vmatprep.subr.bf16.mxu1 %v1679_v53 }
  0x30   :  { %1197 = vmatpush1.bf16.msra.mxu0 %v1624_v16  ;;  %v224_v16 = vadd.f32 %v223_v6, %v222_v60  ;;  %v405_v47 = vrot.slane %v404_v29, 1  ;;  %v143_v60 = vrot.slane %v85_v26, 4  ;;  %v252_v12 = vadd.f32 %v251_v1, %v103_v34  ;;  %v1643_v34 = vld [vmem:[#allocation4 + $0x1d4] ss:$8 sps:$4 sm:$0xff]  }
  0x31   :  { %1198 = vmatprep.subr.bf16.mxu0 %v1625_v17  ;;  %v260_v17 = vadd.f32 %v259_v7, %v258_v61  ;;  %v179_v61 = vrot.slane %v91_v28, 4  ;;  %1154 = vmatpush1.bf16.msra.mxu1 %v1681_v63  ;;  %v1648_v63 = vld [vmem:[#allocation4 + $0x1e0] ss:$8 sps:$4 sm:$0xff]  }
  0x32   :  { %v225_v39 = vrot.slane %v224_v16, 1  ;;  %v406_v58 = vadd.f32 %v405_v47, %v404_v29  ;;  %v144_v6 = vadd.f32 %v143_v60, %v85_v26  ;;  %v1687_v26 = vld [vmem:[#allocation4 + $0x60] ss:$8 sps:$4 sm:$0xff]   ;;  %1155 = vmatprep.subr.bf16.mxu1 %v1685_v9 }
  0x33   :  { %v261_v41 = vrot.slane %v260_v17, 1  ;;  %v180_v7 = vadd.f32 %v179_v61, %v91_v28  ;;  %v1699_v60 = vld [vmem:[#allocation4 + $0x80] ss:$8 sps:$4 sm:$0xff]  }
  0x34   :  { %1199 = vmatpush1.bf16.msra.mxu0 %v1627_v36  ;;  %v153_v36 = vrot.slane %v152_v14, 1  ;;  %v226_v51 = vadd.f32 %v225_v39, %v224_v16  ;;  %v145_v28 = vrot.slane %v144_v6, 2 }
  0x35   :  { %1200 = vmatprep.subr.bf16.mxu0 %v1628_v37  ;;  %v189_v37 = vrot.slane %v188_v15, 1  ;;  %v262_v52 = vadd.f32 %v261_v41, %v260_v17  ;;  %v181_v22 = vrot.slane %v180_v7, 2  ;;  %v325_v17 = vrot.slane %v324_v20, 2  ;;  %1156 = vmatpush1.bf16.msra.mxu1 %v1687_v26  ;;  %v1715_v26 = vld [vmem:[#allocation4 + $0xb4] ss:$8 sps:$4 sm:$0xff]  }
  0x36   :  { %v154_v49 = vadd.f32 %v153_v36, %v152_v14  ;;  %v359_v41 = vrot.slane %v121_v42, 4  ;;  %1157 = vmatprep.subr.bf16.mxu1 %v1691_v23  ;;  %v1672_v23 = vld [vmem:[#allocation4 + $0x224] ss:$8 sps:$4 sm:$0xff]  }
  0x37   :  { %v190_v50 = vadd.f32 %v189_v37, %v188_v15  ;;  %v253_v15 = vrot.slane %v252_v12, 2  ;;  %v182_v40 = vadd.f32 %v181_v22, %v180_v7  ;;  %v326_v33 = vadd.f32 %v325_v17, %v324_v20  ;;  %v1664_v17 = vld [vmem:[#allocation4 + $0x210] ss:$8 sps:$4 sm:$0xff]  }
  0x38   :  { %1201 = vmatpush1.bf16.msra.mxu0 %v1630_v56  ;;  %v334_v56 = vadd.f32 %v333_v45, %v332_v19  ;;  %v360_v53 = vadd.f32 %v359_v41, %v121_v42  ;;  %v1703_v42 = vld [vmem:[#allocation4 + $0x94] ss:$8 sps:$4 sm:$0xff]  }
  0x39   :  { %1202 = vmatprep.subr.bf16.mxu0 %v1631_v57  ;;  %v370_v57 = vadd.f32 %v369_v46, %v368_v27  ;;  %v495_v59 = vsel %vm467_vm0, %v190_v50, %v154_v49  ;;  %v254_v27 = vadd.f32 %v253_v15, %v252_v12  ;;  %v183_v37 = vrot.slane %v182_v40, 1  ;;  %v1645_v49 = vld [vmem:[#allocation4 + $0x1d0] ss:$8 sps:$4 sm:$0xff]   ;;  %1158 = vmatpush1.bf16.msra.mxu1 %v1693_v35 }
  0x3a   :  { %v496_v0 = vsel %vm469_vm1, %v226_v51, %v495_v59  ;;  %1159 = vmatprep.subr.bf16.mxu1 %v1697_v43 }
  0x3b   :  { %v497_v5 = vsel %vm471_vm2, %v262_v52, %v496_v0  ;;  %v255_v46 = vrot.slane %v254_v27, 1  ;;  %v184_v51 = vadd.f32 %v183_v37, %v182_v40  ;;  %v1975_v40 = vld [vmem:[%s2283_s0 + $0x30] sm:$0xff] }
  0x3c   :  { %1203 = vmatpush1.bf16.msra.mxu0 %v1633_v8  ;;  %v216_v8 = vadd.f32 %v215_v62, %v97_v32  ;;  %v498_v11 = vsel %vm473_vm3, %v298_v55, %v497_v5  ;;  %v1999_v37 = vld [vmem:[%s2283_s0 + $0x90] sm:$0xff]  ;;  %v95_v41 = vunpack.c.l.bf16 %v1975_v40  ;;  %v96_v43 = vunpack.c.h.bf16 %v1975_v40 }
  0x3d   :  { %1204 = vmatprep.subr.bf16.mxu0 %v1634_v13  ;;  %v288_v13 = vadd.f32 %v287_v2, %v109_v38  ;;  %v499_v21 = vsel %vm475_vm4, %v334_v56, %v498_v11  ;;  %v146_v38 = vadd.f32 %v145_v28, %v144_v6  ;;  %v256_v55 = vadd.f32 %v255_v46, %v254_v27  ;;  %v1652_v2 = vld [vmem:[#allocation4 + $0x1f4] ss:$8 sps:$4 sm:$0xff]   ;;  %v1705_v6 = vld [vmem:[#allocation4 + $0x90] ss:$8 sps:$4 sm:$0xff]   ;;  %v1658_v28 = vld [vmem:[#allocation4 + $0x200] ss:$8 sps:$4 sm:$0xff]  }
  0x3e   :  { %v217_v32 = vrot.slane %v216_v8, 2  ;;  %v500_v14 = vsel %vm477_vm5, %v370_v57, %v499_v21  ;;  %v395_v57 = vrot.slane %v127_v44, 4  ;;  %1160 = vmatpush1.bf16.msra.mxu1 %v1699_v60  ;;  %v1990_v27 = vld [vmem:[%s2283_s0 + $0x78] sm:$0xff] }
  0x3f   :  { %v289_v16 = vrot.slane %v288_v13, 2  ;;  %v501_v25 = vsel %vm479_vm6, %v406_v58, %v500_v14  ;;  %v147_v36 = vrot.slane %v146_v38, 1  ;;  %v361_v58 = vrot.slane %v360_v53, 2  ;;  %1161 = vmatprep.subr.bf16.mxu1 %v1703_v42  ;;  %v1721_v14 = vld [vmem:[#allocation4 + $0xc4] ss:$8 sps:$4 sm:$0xff]  }
  0x40   :  { %1205 = vmatpush1.bf16.msra.mxu0 %v1636_v48  ;;  %v218_v18 = vadd.f32 %v217_v32, %v216_v8  ;;  %v546_v19 = vmul.f32 0.125, %v501_v25  ;;  %v327_v48 = vrot.slane %v326_v33, 1  ;;  %v396_v62 = vadd.f32 %v395_v57, %v127_v44  ;;  %v1709_v44 = vld [vmem:[#allocation4 + $0xa4] ss:$8 sps:$4 sm:$0xff]   ;;  %v1654_v8 = vld [vmem:[#allocation4 + $0x1f0] ss:$8 sps:$4 sm:$0xff]  }
  0x41   :  { %1206 = vmatprep.subr.bf16.mxu0 %v1637_v54  ;;  %v290_v29 = vadd.f32 %v289_v16, %v288_v13  ;;  %v148_v50 = vadd.f32 %v147_v36, %v146_v38  ;;  %v1646_v54 = vld [vmem:[#allocation4 + $0x1e4] ss:$8 sps:$4 sm:$0xff]   ;;  %v362_v0 = vadd.f32 %v361_v58, %v360_v53  ;;  %v1711_v13 = vld [vmem:[#allocation4 + $0xa0] ss:$8 sps:$4 sm:$0xff]   ;;  %v1717_v32 = vld [vmem:[#allocation4 + $0xb0] ss:$8 sps:$4 sm:$0xff]  }
  0x42   :  { %v219_v39 = vrot.slane %v218_v18, 1  ;;  %v552_v45 = vpack.c.bf16 %v546_v19, %v546_v19  ;;  %v328_v61 = vadd.f32 %v327_v48, %v326_v33  ;;  %v397_v3 = vrot.slane %v396_v62, 2  ;;  %1162 = vmatpush1.bf16.msra.mxu1 %v1705_v6  ;;  %v1666_v16 = vld [vmem:[#allocation4 + $0x214] ss:$8 sps:$4 sm:$0xff]   ;;  %v1733_v53 = vld [vmem:[#allocation4 + $0xe4] ss:$8 sps:$4 sm:$0xff]  }
  0x43   :  { %v291_v47 = vrot.slane %v290_v29, 1  ;;  %v488_v59 = vsel %vm467_vm0, %v184_v51, %v148_v50  ;;  %v363_v5 = vrot.slane %v362_v0, 1  ;;  %1163 = vmatprep.subr.bf16.mxu1 %v1709_v44  ;;  %v1965_v25 = vld [vmem:[%s2283_s0] sm:$0xff]  ;;  %v1970_v38 = vld [vmem:[%s2283_s0 + $0x18] sm:$0xff]  ;;  %v113_v50 = vunpack.c.l.bf16 %v1990_v27 }
  0x44   :  { %1207 = vmatpush1.bf16.msra.mxu0 %v1639_v4  ;;  %v220_v52 = vadd.f32 %v219_v39, %v218_v18  ;;  %1216 = vmatprep.mubr.bf16.mxu0 %v552_v45  ;;  %v398_v7 = vadd.f32 %v397_v3, %v396_v62  ;;  %v1980_v18 = vld [vmem:[%s2283_s0 + $0x48] sm:$0xff]  ;;  %v1985_v19 = vld [vmem:[%s2283_s0 + $0x60] sm:$0xff]  ;;  %v84_v33 = vunpack.c.h.bf16 %v1965_v25  ;;  %v89_v35 = vunpack.c.l.bf16 %v1970_v38  ;;  %v1676_v6 = vld [vmem:[#allocation4 + $0x230] ss:$8 sps:$4 sm:$0xff]  }
  0x45   :  { %1208 = vmatprep.subr.bf16.mxu0 %v1640_v10  ;;  %v292_v56 = vadd.f32 %v291_v47, %v290_v29  ;;  %v364_v9 = vadd.f32 %v363_v5, %v362_v0  ;;  %v1660_v10 = vld [vmem:[#allocation4 + $0x204] ss:$8 sps:$4 sm:$0xff]   ;;  %v83_v29 = vunpack.c.l.bf16 %v1965_v25  ;;  %v90_v36 = vunpack.c.h.bf16 %v1970_v38  ;;  %v1729_v47 = vld [vmem:[#allocation4 + $0xd0] ss:$8 sps:$4 sm:$0xff]   ;;  %v1678_v58 = vld [vmem:[#allocation4 + $0x234] ss:$8 sps:$4 sm:$0xff]  }
  0x46   :  { %v489_v30 = vsel %vm469_vm1, %v220_v52, %v488_v59  ;;  %v399_v11 = vrot.slane %v398_v7, 1  ;;  %1164 = vmatpush1.bf16.msra.mxu1 %v1711_v13  ;;  %v2004_v39 = vld [vmem:[%s2283_s0 + $0xa8] sm:$0xff]  ;;  %v101_v45 = vunpack.c.l.bf16 %v1980_v18  ;;  %v102_v46 = vunpack.c.h.bf16 %v1980_v18 }
  0x47   :  { %v490_v1 = vsel %vm471_vm2, %v256_v55, %v489_v30  ;;  %1165 = vmatprep.subr.bf16.mxu1 %v1715_v26  ;;  %v107_v48 = vunpack.c.l.bf16 %v1985_v19  ;;  %v114_v51 = vunpack.c.h.bf16 %v1990_v27  ;;  %v1670_v52 = vld [vmem:[#allocation4 + $0x220] ss:$8 sps:$4 sm:$0xff]   ;;  %v120_v55 = vunpack.c.h.bf16 %v1999_v37 }
  0x48   :  { %1209 = vmatpush1.bf16.msra.mxu0 %v1642_v24  ;;  %v491_v4 = vsel %vm473_vm3, %v292_v56, %v490_v1  ;;  %v400_v20 = vadd.f32 %v399_v11, %v398_v7  ;;  %v1723_v24 = vld [vmem:[#allocation4 + $0xc0] ss:$8 sps:$4 sm:$0xff]   ;;  %v125_v56 = vunpack.c.l.bf16 %v2004_v39  ;;  %v126_v57 = vunpack.c.h.bf16 %v2004_v39  ;;  %v1739_v7 = vld [vmem:[#allocation4 + $0xf4] ss:$8 sps:$4 sm:$0xff]  }
  0x49   :  { %1210 = vmatprep.subr.bf16.mxu0 %v1643_v34  ;;  %v492_v31 = vsel %vm475_vm4, %v328_v61, %v491_v4  ;;  %v1727_v34 = vld [vmem:[#allocation4 + $0xd4] ss:$8 sps:$4 sm:$0xff]   ;;  %v137_v59 = vrot.slane %v84_v33, 4  ;;  %v173_v60 = vrot.slane %v90_v36, 4  ;;  %v209_v61 = vrot.slane %v96_v43, 4 }
  0x4a   :  { %v493_v12 = vsel %vm477_vm5, %v364_v9, %v492_v31  ;;  %1166 = vmatpush1.bf16.msra.mxu1 %v1717_v32  ;;  %v245_v62 = vrot.slane %v102_v46, 4  ;;  %v317_v42 = vrot.slane %v114_v51, 4  ;;  %v389_v0 = vrot.slane %v126_v57, 4  ;;  %v1735_v1 = vld [vmem:[#allocation4 + $0xe0] ss:$8 sps:$4 sm:$0xff]  }
  0x4b   :  { %v494_v21 = vsel %vm479_vm6, %v400_v20, %v493_v12  ;;  %1167 = vmatprep.subr.bf16.mxu1 %v1721_v14  ;;  %v174_v3 = vadd.f32 %v173_v60, %v90_v36  ;;  %v210_v4 = vadd.f32 %v209_v61, %v96_v43  ;;  %v131_v9 = vrot.slane %v83_v29, 4  ;;  %v1741_v32 = vld [vmem:[#allocation4 + $0xf0] ss:$8 sps:$4 sm:$0xff]   ;;  %v1690_v43 = vld [vmem:[#allocation4 + $0x254] ss:$8 sps:$4 sm:$0xff]  }
  0x4c   :  { %1211 = vmatpush1.bf16.msra.mxu0 %v1645_v49  ;;  %v545_v22 = vmul.f32 0.125, %v494_v21  ;;  %v108_v49 = vunpack.c.h.bf16 %v1985_v19  ;;  %v246_v5 = vadd.f32 %v245_v62, %v102_v46  ;;  %v318_v44 = vadd.f32 %v317_v42, %v114_v51  ;;  %v1688_v62 = vld [vmem:[#allocation4 + $0x250] ss:$8 sps:$4 sm:$0xff]  }
  0x4d   :  { %1212 = vmatprep.subr.bf16.mxu0 %v1646_v54  ;;  %v119_v54 = vunpack.c.l.bf16 %v1999_v37  ;;  %v175_v12 = vrot.slane %v174_v3, 2  ;;  %v211_v13 = vrot.slane %v210_v4, 2 }
  0x4e   :  { %v551_v15 = vpack.c.bf16 %v545_v22, %v545_v22  ;;  %1168 = vmatpush1.bf16.msra.mxu1 %v1723_v24  ;;  %v281_v30 = vrot.slane %v108_v49, 4  ;;  %v247_v20 = vrot.slane %v246_v5, 2  ;;  %v319_v21 = vrot.slane %v318_v44, 2 }
  0x4f   :  { %1169 = vmatprep.subr.bf16.mxu1 %v1727_v34  ;;  %v390_v22 = vadd.f32 %v389_v0, %v126_v57  ;;  %v347_v27 = vrot.slane %v119_v54, 4 }
  0x50   :  { %1213 = vmatpush1.bf16.msra.mxu0 %v1648_v63  ;;  %v353_v63 = vrot.slane %v120_v55, 4  ;;  %v282_v31 = vadd.f32 %v281_v30, %v108_v49  ;;  %v320_v34 = vadd.f32 %v319_v21, %v318_v44  ;;  %v275_v44 = vrot.slane %v107_v48, 4 }
  0x51   :  { %1214 = vmatprep.subr.bf16.mxu0 %v1652_v2  ;;  %v138_v2 = vadd.f32 %v137_v59, %v84_v33  ;;  %v391_v36 = vrot.slane %v390_v22, 2 }
  0x52   :  { %1170 = vmatpush1.bf16.msra.mxu1 %v1729_v47  ;;  %v283_v26 = vrot.slane %v282_v31, 2 }
  0x53   :  { %1171 = vmatprep.subr.bf16.mxu1 %v1733_v53  ;;  %v139_v11 = vrot.slane %v138_v2, 2  ;;  %v321_v53 = vrot.slane %v320_v34, 1  ;;  %v392_v57 = vadd.f32 %v391_v36, %v390_v22 }
  0x54   :  { %1215 = vmatpush1.bf16.msra.mxu0 %v1654_v8  ;;  %v354_v8 = vadd.f32 %v353_v63, %v120_v55  ;;  %v284_v24 = vadd.f32 %v283_v26, %v282_v31  ;;  %v239_v31 = vrot.slane %v101_v45, 4  ;;  %v1702_v26 = vld [vmem:[#allocation4 + $0x274] ss:$8 sps:$4 sm:$0xff]  }
  0x55   :  { %1225 = vmatprep.subr.bf16.mxu0 %v1660_v10  ;;  %v1684_v10 = vld [vmem:[#allocation4 + $0x244] ss:$8 sps:$4 sm:$0xff]   ;;  %v140_v14 = vadd.f32 %v139_v11, %v138_v2  ;;  %v322_v42 = vadd.f32 %v321_v53, %v320_v34  ;;  %v393_v0 = vrot.slane %v392_v57, 1  ;;  %v348_v53 = vadd.f32 %v347_v27, %v119_v54  ;;  %v1714_v54 = vld [vmem:[#allocation4 + $0x294] ss:$8 sps:$4 sm:$0xff]  }
  0x56   :  { %1172 = vmatpush1.bf16.msra.mxu1 %v1735_v1  ;;  %v1696_v1 = vld [vmem:[#allocation4 + $0x264] ss:$8 sps:$4 sm:$0xff]  }
  0x57   :  { %1217 = vmatmul.mubr.bf16.vlgmr.msra.gmra.mrb[0].mxu0 %v551_v15  ;;  %v176_v15 = vadd.f32 %v175_v12, %v174_v3  ;;  %1173 = vmatprep.subr.bf16.mxu1 %v1739_v7  ;;  %v141_v46 = vrot.slane %v140_v14, 1  ;;  %v132_v3 = vadd.f32 %v131_v9, %v83_v29  ;;  %v1694_v9 = vld [vmem:[#allocation4 + $0x260] ss:$8 sps:$4 sm:$0xff]   ;;  %v240_v12 = vadd.f32 %v239_v31, %v101_v45 }
  0x58   :  { %1226 = vmatpush1.bf16.msra.mxu0 %v1658_v28  ;;  %v355_v28 = vrot.slane %v354_v8, 2  ;;  %v2092_v31 = vld [vmem:[%s2283_s0 + $0x88] sm:$0xff] }
  0x59   :  { %1227 = vmatprep.subr.bf16.mxu0 %v1666_v16  ;;  %v212_v16 = vadd.f32 %v211_v13, %v210_v4  ;;  %v177_v47 = vrot.slane %v176_v15, 1  ;;  %v167_v4 = vrot.slane %v89_v35, 4  ;;  %v276_v13 = vadd.f32 %v275_v44, %v107_v48  ;;  %v2097_v44 = vld [vmem:[%s2283_s0 + $0xa0] sm:$0xff] }
  0x5a   :  { %v356_v33 = vadd.f32 %v355_v28, %v354_v8  ;;  %1174 = vmatpush1.bf16.msra.mxu1 %v1741_v32  ;;  %v241_v28 = vrot.slane %v240_v12, 2 }
  0x5b   :  { %v213_v49 = vrot.slane %v212_v16, 1  ;;  %v178_v59 = vadd.f32 %v177_v47, %v176_v15  ;;  %v168_v25 = vadd.f32 %v167_v4, %v89_v35  ;;  %v277_v22 = vrot.slane %v276_v13, 2  ;;  %v2084_v4 = vld [vmem:[%s2283_s0 + $0x70] sm:$0xff] }
  0x5c   :  { %1228 = vmatpush1.bf16.msra.mxu0 %v1664_v17  ;;  %v248_v17 = vadd.f32 %v247_v20, %v246_v5  ;;  %v357_v55 = vrot.slane %v356_v33, 1  ;;  %v203_v5 = vrot.slane %v95_v41, 4  ;;  %v311_v20 = vrot.slane %v113_v50, 4 }
  0x5d   :  { %1229 = vmatprep.subr.bf16.mxu0 %v1672_v23  ;;  %v1682_v23 = vld [vmem:[#allocation4 + $0x240] ss:$8 sps:$4 sm:$0xff]   ;;  %v214_v60 = vadd.f32 %v213_v49, %v212_v16  ;;  %v169_v40 = vrot.slane %v168_v25, 2  ;;  %v242_v16 = vadd.f32 %v241_v28, %v240_v12  ;;  %v123_v28 = vunpack.c.l.bf16 %v2097_v44 }
  0x5e   :  { %v249_v51 = vrot.slane %v248_v17, 1  ;;  %v358_v63 = vadd.f32 %v357_v55, %v356_v33  ;;  %v204_v29 = vadd.f32 %v203_v5, %v95_v41  ;;  %v312_v18 = vadd.f32 %v311_v20, %v113_v50  ;;  %v2054_v50 = vld [vmem:[%s2283_s0 + $0x10] sm:$0xff] }
  0x5f   :  { %v170_v48 = vadd.f32 %v169_v40, %v168_v25  ;;  %v383_v55 = vrot.slane %v125_v56, 4  ;;  %v87_v37 = vunpack.c.l.bf16 %v2054_v50  ;;  %v112_v40 = vunpack.c.h.bf16 %v2084_v4 }
  0x60   :  { %1230 = vmatpush1.bf16.msra.mxu0 %v1670_v52  ;;  %v285_v52 = vrot.slane %v284_v24, 1  ;;  %v250_v61 = vadd.f32 %v249_v51, %v248_v17  ;;  %v205_v41 = vrot.slane %v204_v29, 2  ;;  %v278_v17 = vadd.f32 %v277_v22, %v276_v13  ;;  %v1720_v13 = vld [vmem:[#allocation4 + $0x2a4] ss:$8 sps:$4 sm:$0xff]  }
  0x61   :  { %1231 = vmatprep.subr.bf16.mxu0 %v1678_v58  ;;  %v142_v58 = vadd.f32 %v141_v46, %v140_v14  ;;  %v1700_v14 = vld [vmem:[#allocation4 + $0x270] ss:$8 sps:$4 sm:$0xff]   ;;  %v171_v33 = vrot.slane %v170_v48, 1  ;;  %v243_v46 = vrot.slane %v242_v16, 1 }
  0x62   :  { %v286_v30 = vadd.f32 %v285_v52, %v284_v24  ;;  %v206_v32 = vadd.f32 %v205_v41, %v204_v29  ;;  %v1708_v24 = vld [vmem:[#allocation4 + $0x284] ss:$8 sps:$4 sm:$0xff]   ;;  %v279_v47 = vrot.slane %v278_v17, 1  ;;  %v2104_v29 = vld [vmem:[%s2283_s0 + $0xb8] sm:$0xff]  ;;  %v117_v41 = vunpack.c.l.bf16 %v2092_v31 }
  0x63   :  { %v481_v2 = vsel %vm467_vm0, %v178_v59, %v142_v58  ;;  %v172_v51 = vadd.f32 %v171_v33, %v170_v48  ;;  %v1706_v58 = vld [vmem:[#allocation4 + $0x280] ss:$8 sps:$4 sm:$0xff]   ;;  %v244_v59 = vadd.f32 %v243_v46, %v242_v16  ;;  %v305_v33 = vrot.slane %v112_v40, 4 }
  0x64   :  { %1232 = vmatpush1.bf16.msra.mxu0 %v1676_v6  ;;  %v394_v6 = vadd.f32 %v393_v0, %v392_v57  ;;  %v482_v7 = vsel %vm469_vm1, %v214_v60, %v481_v2  ;;  %v207_v36 = vrot.slane %v206_v32, 1  ;;  %v2063_v57 = vld [vmem:[%s2283_s0 + $0x28] sm:$0xff]  ;;  %v280_v60 = vadd.f32 %v279_v47, %v278_v17  ;;  %v2077_v0 = vld [vmem:[%s2283_s0 + $0x58] sm:$0xff] }
  0x65   :  { %1233 = vmatprep.subr.bf16.mxu0 %v1684_v10  ;;  %v483_v8 = vsel %vm471_vm2, %v250_v61, %v482_v7  ;;  %v133_v10 = vrot.slane %v132_v3, 2  ;;  %v93_v39 = vunpack.c.l.bf16 %v2063_v57  ;;  %v106_v12 = vunpack.c.h.bf16 %v2077_v0  ;;  %v1718_v48 = vld [vmem:[#allocation4 + $0x2a0] ss:$8 sps:$4 sm:$0xff]   ;;  %v1726_v17 = vld [vmem:[#allocation4 + $0x2b4] ss:$8 sps:$4 sm:$0xff]  }
  0x66   :  { %v484_v11 = vsel %vm473_vm3, %v286_v30, %v483_v8  ;;  %v208_v52 = vadd.f32 %v207_v36, %v206_v32  ;;  %v349_v30 = vrot.slane %v348_v53, 2  ;;  %v130_v32 = vunpack.c.h.bf16 %v2104_v29 }
  0x67   :  { %v485_v38 = vsel %vm475_vm4, %v322_v42, %v484_v11  ;;  %v134_v35 = vadd.f32 %v133_v10, %v132_v3  ;;  %v384_v42 = vadd.f32 %v383_v55, %v125_v56  ;;  %v94_v56 = vunpack.c.h.bf16 %v2063_v57  ;;  %v1712_v10 = vld [vmem:[#allocation4 + $0x290] ss:$8 sps:$4 sm:$0xff]   ;;  %v1747_v57 = vld [vmem:[#allocation4 + $0x2f4] ss:$8 sps:$4 sm:$0xff]  }
  0x68   :  { %1234 = vmatpush1.bf16.msra.mxu0 %v1682_v23  ;;  %v486_v21 = vsel %vm477_vm5, %v358_v63, %v485_v38  ;;  %v313_v23 = vrot.slane %v312_v18, 2  ;;  %v350_v5 = vadd.f32 %v349_v30, %v348_v53  ;;  %v105_v11 = vunpack.c.l.bf16 %v2077_v0  ;;  %v1724_v53 = vld [vmem:[#allocation4 + $0x2b0] ss:$8 sps:$4 sm:$0xff]  }
  0x69   :  { %1235 = vmatprep.subr.bf16.mxu0 %v1690_v43  ;;  %v487_v19 = vsel %vm479_vm6, %v394_v6, %v486_v21  ;;  %v135_v45 = vrot.slane %v134_v35, 1  ;;  %v385_v6 = vrot.slane %v384_v42, 2  ;;  %v118_v21 = vunpack.c.h.bf16 %v2092_v31  ;;  %v1285_v31 = vld [vmem:[%s2286_s3 + $0x88] sm:$0xff] }
  0x6a   :  { %v544_v15 = vmul.f32 0.125, %v487_v19  ;;  %v314_v49 = vadd.f32 %v313_v23, %v312_v18  ;;  %v351_v20 = vrot.slane %v350_v5, 1  ;;  %v124_v19 = vunpack.c.h.bf16 %v2097_v44  ;;  %v1269_v44 = vld [vmem:[%s2286_s3 + $0x8] sm:$0xff] }
  0x6b   :  { %v136_v34 = vadd.f32 %v135_v45, %v134_v35  ;;  %v111_v35 = vunpack.c.l.bf16 %v2084_v4  ;;  %v129_v45 = vunpack.c.l.bf16 %v2104_v29  ;;  %v341_v46 = vrot.slane %v118_v21, 4 }
  0x6c   :  { %1236 = vmatpush1.bf16.msra.mxu0 %v1688_v62  ;;  %v550_v43 = vpack.c.bf16 %v544_v15, %v544_v15  ;;  %v315_v61 = vrot.slane %v314_v49, 1  ;;  %v2068_v62 = vld [vmem:[%s2283_s0 + $0x40] sm:$0xff]  ;;  %v352_v22 = vadd.f32 %v351_v20, %v350_v5  ;;  %v197_v15 = vrot.slane %v94_v56, 4 }
  0x6d   :  { %1237 = vmatprep.subr.bf16.mxu0 %v1696_v1  ;;  %v468_v63 = vsel %vm467_vm0, %v172_v51, %v136_v34  ;;  %v88_v1 = vunpack.c.h.bf16 %v2054_v50  ;;  %v99_v8 = vunpack.c.l.bf16 %v2068_v62  ;;  %v269_v34 = vrot.slane %v106_v12, 4 }
  0x6e   :  { %1175 = vmatprep.mubr.bf16.mxu1 %v550_v43  ;;  %v316_v2 = vadd.f32 %v315_v61, %v314_v49  ;;  %v470_v3 = vsel %vm469_vm1, %v208_v52, %v468_v63  ;;  %v198_v27 = vadd.f32 %v197_v15, %v94_v56  ;;  %v306_v51 = vadd.f32 %v305_v33, %v112_v40  ;;  %v1732_v61 = vld [vmem:[#allocation4 + $0x2c4] ss:$8 sps:$4 sm:$0xff]  }
  0x6f   :  { %v472_v7 = vsel %vm471_vm2, %v244_v59, %v470_v3  ;;  %v270_v49 = vadd.f32 %v269_v34, %v106_v12  ;;  %v377_v52 = vrot.slane %v124_v19, 4  ;;  %v413_v20 = vrot.slane %v130_v32, 4 }
  0x70   :  { %1238 = vmatpush1.bf16.msra.mxu0 %v1694_v9  ;;  %v474_v25 = vsel %vm473_vm3, %v280_v60, %v472_v7  ;;  %v100_v9 = vunpack.c.h.bf16 %v2068_v62  ;;  %v199_v59 = vrot.slane %v198_v27, 2  ;;  %v307_v30 = vrot.slane %v306_v51, 2 }
  0x71   :  { %1239 = vmatprep.subr.bf16.mxu0 %v1702_v26  ;;  %v386_v26 = vadd.f32 %v385_v6, %v384_v42  ;;  %v476_v38 = vsel %vm475_vm4, %v316_v2, %v474_v25  ;;  %v342_v42 = vadd.f32 %v341_v46, %v118_v21  ;;  %v378_v63 = vadd.f32 %v377_v52, %v124_v19  ;;  %v1730_v25 = vld [vmem:[#allocation4 + $0x2c0] ss:$8 sps:$4 sm:$0xff]  }
  0x72   :  { %v233_v16 = vrot.slane %v100_v9, 4  ;;  %v200_v3 = vadd.f32 %v199_v59, %v198_v27  ;;  %v308_v6 = vadd.f32 %v307_v30, %v306_v51  ;;  %v191_v27 = vrot.slane %v93_v39, 4 }
  0x73   :  { %v387_v18 = vrot.slane %v386_v26, 1  ;;  %v343_v7 = vrot.slane %v342_v42, 2 }
  0x74   :  { %1240 = vmatpush1.bf16.msra.mxu0 %v1700_v14  ;;  %v161_v14 = vrot.slane %v88_v1, 4  ;;  %v234_v43 = vadd.f32 %v233_v16, %v100_v9  ;;  %v201_v12 = vrot.slane %v200_v3, 1  ;;  %v309_v40 = vrot.slane %v308_v6, 1 }
  0x75   :  { %1241 = vmatprep.subr.bf16.mxu0 %v1708_v24  ;;  %v388_v23 = vadd.f32 %v387_v18, %v386_v26  ;;  %v478_v24 = vsel %vm477_vm5, %v352_v22, %v476_v38  ;;  %v1738_v26 = vld [vmem:[#allocation4 + $0x2d4] ss:$8 sps:$4 sm:$0xff]   ;;  %v344_v21 = vadd.f32 %v343_v7, %v342_v42 }
  0x76   :  { %v162_v36 = vadd.f32 %v161_v14, %v88_v1  ;;  %v235_v60 = vrot.slane %v234_v43, 2  ;;  %v202_v19 = vadd.f32 %v201_v12, %v200_v3  ;;  %v414_v14 = vadd.f32 %v413_v20, %v130_v32 }
  0x77   :  { %v480_v47 = vsel %vm479_vm6, %v388_v23, %v478_v24  ;;  %v310_v16 = vadd.f32 %v309_v40, %v308_v6  ;;  %v1736_v24 = vld [vmem:[#allocation4 + $0x2d0] ss:$8 sps:$4 sm:$0xff]  }
  0x78   :  { %1242 = vmatpush1.bf16.msra.mxu0 %v1706_v58  ;;  %v543_v55 = vmul.f32 0.125, %v480_v47  ;;  %v163_v58 = vrot.slane %v162_v36, 2  ;;  %v236_v56 = vadd.f32 %v235_v60, %v234_v43  ;;  %v415_v34 = vrot.slane %v414_v14, 2  ;;  %v1744_v43 = vld [vmem:[#allocation4 + $0x2e4] ss:$8 sps:$4 sm:$0xff]  }
  0x79   :  { %1243 = vmatprep.subr.bf16.mxu0 %v1714_v54  ;;  %v271_v54 = vrot.slane %v270_v49, 2  ;;  %v263_v60 = vrot.slane %v105_v11, 4 }
  0x7a   :  { %v549_v1 = vpack.c.bf16 %v543_v55, %v543_v55  ;;  %v164_v2 = vadd.f32 %v163_v58, %v162_v36  ;;  %v155_v36 = vrot.slane %v87_v37, 4  ;;  %v416_v51 = vadd.f32 %v415_v34, %v414_v14  ;;  %v1268_v14 = vld [vmem:[%s2286_s3] sm:$0xff]  ;;  %v1270_v34 = vld [vmem:[%s2286_s3 + $0x10] sm:$0xff] }
  0x7b   :  { %v272_v5 = vadd.f32 %v271_v54, %v270_v49  ;;  %v227_v49 = vrot.slane %v99_v8, 4  ;;  %v192_v55 = vadd.f32 %v191_v27, %v93_v39  ;;  %v1742_v54 = vld [vmem:[#allocation4 + $0x2e0] ss:$8 sps:$4 sm:$0xff]   ;;  %v264_v62 = vadd.f32 %v263_v60, %v105_v11 }
  0x7c   :  { %1244 = vmatpush1.bf16.msra.mxu0 %v1712_v10  ;;  %v379_v10 = vrot.slane %v378_v63, 2  ;;  %1176 = vmatmul.mubr.bf16.vlgmr.msra.gmra.mrb[0].mxu1 %v549_v1  ;;  %v165_v9 = vrot.slane %v164_v2, 1  ;;  %v417_v30 = vrot.slane %v416_v51, 1 }
  0x7d   :  { %1245 = vmatprep.subr.bf16.mxu0 %v1720_v13  ;;  %v237_v13 = vrot.slane %v236_v56, 1  ;;  %v273_v38 = vrot.slane %v272_v5, 1  ;;  %v228_v59 = vadd.f32 %v227_v49, %v99_v8  ;;  %v193_v42 = vrot.slane %v192_v55, 2 }
  0x7e   :  { %v380_v22 = vadd.f32 %v379_v10, %v378_v63  ;;  %v166_v18 = vadd.f32 %v165_v9, %v164_v2  ;;  %v418_v1 = vadd.f32 %v417_v30, %v416_v51  ;;  %v265_v6 = vrot.slane %v264_v62, 2  ;;  %v1272_v30 = vld [vmem:[%s2286_s3 + $0x20] sm:$0xff] }
  0x7f   :  { %v274_v15 = vadd.f32 %v273_v38, %v272_v5  ;;  %v229_v63 = vrot.slane %v228_v59, 2  ;;  %v194_v3 = vadd.f32 %v193_v42, %v192_v55  ;;  %v371_v10 = vrot.slane %v123_v28, 4 }
  0x80   :  { %1246 = vmatpush1.bf16.msra.mxu0 %v1718_v48  ;;  %v238_v48 = vadd.f32 %v237_v13, %v236_v56  ;;  %v381_v23 = vrot.slane %v380_v22, 1  ;;  %v509_v33 = vsel %vm467_vm0, %v202_v19, %v166_v18  ;;  %v335_v56 = vrot.slane %v117_v41, 4 }
  0x81   :  { %1247 = vmatprep.subr.bf16.mxu0 %v1726_v17  ;;  %v345_v17 = vrot.slane %v344_v21, 1  ;;  %v230_v5 = vadd.f32 %v229_v63, %v228_v59  ;;  %v195_v9 = vrot.slane %v194_v3, 1  ;;  %v266_v13 = vadd.f32 %v265_v6, %v264_v62  ;;  %v1291_v63 = vld [vmem:[%s2286_s3 + $0xb8] sm:$0xff]  ;;  %v1292_v6 = vld [vmem:[%s2286_s3 + $0xc0] sm:$0xff] }
  0x82   :  { %v382_v47 = vadd.f32 %v381_v23, %v380_v22  ;;  %v510_v32 = vsel %vm469_vm1, %v238_v48, %v509_v33  ;;  %v336_v4 = vadd.f32 %v335_v56, %v117_v41  ;;  %v1284_v22 = vld [vmem:[%s2286_s3 + $0x80] sm:$0xff]  ;;  %v1271_v33 = vld [vmem:[%s2286_s3 + $0x18] sm:$0xff]  ;;  %v1560_v51 = vpack.c.bf16 %v1269_v44, %v1268_v14  ;;  %v1298_v14 = vld [vmem:[%s2286_s3 + $0xf0] sm:$0xff] }
  0x83   :  { %v346_v46 = vadd.f32 %v345_v17, %v344_v21  ;;  %v511_v52 = vsel %vm471_vm2, %v274_v15, %v510_v32  ;;  %v231_v12 = vrot.slane %v230_v5, 1  ;;  %v196_v38 = vadd.f32 %v195_v9, %v194_v3  ;;  %v1274_v3 = vld [vmem:[%s2286_s3 + $0x30] sm:$0xff]  ;;  %v1275_v56 = vld [vmem:[%s2286_s3 + $0x38] sm:$0xff]  ;;  %v1276_v9 = vld [vmem:[%s2286_s3 + $0x40] sm:$0xff] }
  0x84   :  { %1248 = vmatpush1.bf16.msra.mxu0 %v1724_v53  ;;  %v156_v53 = vadd.f32 %v155_v36, %v87_v37  ;;  %v512_v58 = vsel %vm473_vm3, %v310_v16, %v511_v52  ;;  %v337_v40 = vrot.slane %v336_v4, 2  ;;  %v372_v21 = vadd.f32 %v371_v10, %v123_v28  ;;  %v1286_v28 = vld [vmem:[%s2286_s3 + $0x90] sm:$0xff]  ;;  %v1288_v52 = vld [vmem:[%s2286_s3 + $0xa0] sm:$0xff]  ;;  %v1299_v44 = vld [vmem:[%s2286_s3 + $0xf8] sm:$0xff] }
  0x85   :  { %1249 = vmatprep.subr.bf16.mxu0 %v1732_v61  ;;  %v299_v61 = vrot.slane %v111_v35, 4  ;;  %v513_v50 = vsel %vm475_vm4, %v346_v46, %v512_v58  ;;  %v232_v18 = vadd.f32 %v231_v12, %v230_v5  ;;  %v267_v19 = vrot.slane %v266_v13, 1 }
  0x86   :  { %v157_v37 = vrot.slane %v156_v53, 2  ;;  %v514_v39 = vsel %vm477_vm5, %v382_v47, %v513_v50  ;;  %v338_v15 = vadd.f32 %v337_v40, %v336_v4  ;;  %v373_v16 = vrot.slane %v372_v21, 2  ;;  %v1273_v50 = vld [vmem:[%s2286_s3 + $0x28] sm:$0xff]  ;;  %v1279_v40 = vld [vmem:[%s2286_s3 + $0x58] sm:$0xff] }
  0x87   :  { %v300_v8 = vadd.f32 %v299_v61, %v111_v35  ;;  %v515_v0 = vsel %vm479_vm6, %v418_v1, %v514_v39  ;;  %v407_v17 = vrot.slane %v129_v45, 4  ;;  %v268_v36 = vadd.f32 %v267_v19, %v266_v13  ;;  %v1290_v39 = vld [vmem:[%s2286_s3 + $0xb0] sm:$0xff]  ;;  %v1277_v4 = vld [vmem:[%s2286_s3 + $0x48] sm:$0xff] }
  0x88   :  { %1250 = vmatpush1.bf16.msra.mxu0 %v1730_v25  ;;  %v158_v2 = vadd.f32 %v157_v37, %v156_v53  ;;  %v1745_v25 = vld [vmem:[#allocation4 + $0x2f0] ss:$8 sps:$4 sm:$0xff]   ;;  %v548_v35 = vmul.f32 0.125, %v515_v0  ;;  %v1558_v46 = vpack.c.bf16 %v1285_v31, %v1284_v22  ;;  %v339_v47 = vrot.slane %v338_v15, 1  ;;  %v1289_v53 = vld [vmem:[%s2286_s3 + $0xa8] sm:$0xff]  ;;  %v1296_v22 = vld [vmem:[%s2286_s3 + $0xe0] sm:$0xff] }
  0x89   :  { %1251 = vmatprep.subr.bf16.mxu0 %v1738_v26  ;;  %v301_v7 = vrot.slane %v300_v8, 2  ;;  %v374_v32 = vadd.f32 %v373_v16, %v372_v21  ;;  %v408_v49 = vadd.f32 %v407_v17, %v129_v45  ;;  %v1564_v59 = vpack.c.bf16 %v1271_v33, %v1270_v34  ;;  %v1294_v13 = vld [vmem:[%s2286_s3 + $0xd0] sm:$0xff]  ;;  %v1297_v31 = vld [vmem:[%s2286_s3 + $0xe8] sm:$0xff]  ;;  %v1283_v16 = vld [vmem:[%s2286_s3 + $0x78] sm:$0xff] }
  0x8a   :  { %v159_v11 = vrot.slane %v158_v2, 1  ;;  %v554_v41 = vpack.c.bf16 %v548_v35, %v548_v35  ;;  %1559 = vmatprep.subr.bf16.mxu1 %v1558_v46  ;;  %v340_v60 = vadd.f32 %v339_v47, %v338_v15  ;;  %v1566_v45 = vpack.c.bf16 %v1289_v53, %v1288_v52  ;;  %v1281_v19 = vld [vmem:[%s2286_s3 + $0x68] sm:$0xff]  ;;  %v1282_v15 = vld [vmem:[%s2286_s3 + $0x70] sm:$0xff]  ;;  %v651_v46 = vld [vmem:[%s2285_s2] sm:$0x3] }
  0x8b   :  { %v302_v20 = vadd.f32 %v301_v7, %v300_v8  ;;  %v375_v61 = vrot.slane %v374_v32, 1  ;;  %1561 = vmatpush3.bf16.msra.mxu1 %v1560_v51  ;;  %v1568_v8 = vpack.c.bf16 %v1273_v50, %v1272_v30  ;;  %v1293_v7 = vld [vmem:[%s2286_s3 + $0xc8] sm:$0xff]  ;;  %v1576_v12 = vpack.c.bf16 %v1277_v4, %v1276_v9  ;;  %v1520_v30 = vld [vmem:[%s2287_s4] ss:$0 sm:$0xff]  ;;  %s1804_s4 = smov [#allocation7]  }
  0x8c   :  { %1252 = vmatpush1.bf16.msra.mxu0 %v1736_v24  ;;  %v160_v26 = vadd.f32 %v159_v11, %v158_v2  ;;  %v1287_v24 = vld [vmem:[%s2286_s3 + $0x98] sm:$0xff]  ;;  %1257 = vmatprep.mubr.bf16.mxu0 %v554_v41  ;;  %v1570_v2 = vpack.c.bf16 %v1291_v63, %v1290_v39  ;;  %v1574_v11 = vpack.c.bf16 %v1293_v7, %v1292_v6 }
  0x8d   :  { %1253 = vmatprep.subr.bf16.mxu0 %v1744_v43  ;;  %v303_v48 = vrot.slane %v302_v20, 1  ;;  %v1562_v58 = vpack.c.bf16 %v1287_v24, %v1286_v28  ;;  %v376_v37 = vadd.f32 %v375_v61, %v374_v32  ;;  %v1582_v41 = vpack.c.bf16 %v1297_v31, %v1296_v22 }
  0x8e   :  { %v502_v23 = vsel %vm467_vm0, %v196_v38, %v160_v26  ;;  %v1278_v38 = vld [vmem:[%s2286_s3 + $0x50] sm:$0xff]  ;;  %v1586_v28 = vpack.c.bf16 %v1299_v44, %v1298_v14  ;;  %v1588_v17 = vpack.c.bf16 %v1283_v16, %v1282_v15 }
  0x8f   :  { %v304_v27 = vadd.f32 %v303_v48, %v302_v20  ;;  %v503_v43 = vsel %vm469_vm1, %v232_v18, %v502_v23  ;;  %1563 = vmatprep.subr.bf16.mxu1 %v1562_v58  ;;  %v1295_v20 = vld [vmem:[%s2286_s3 + $0xd8] sm:$0xff]  ;;  %v1580_v21 = vpack.c.bf16 %v1279_v40, %v1278_v38  ;;  %v1280_v18 = vld [vmem:[%s2286_s3 + $0x60] sm:$0xff] }
  0x90   :  { %1254 = vmatpush1.bf16.msra.mxu0 %v1742_v54  ;;  %v504_v55 = vsel %vm471_vm2, %v268_v36, %v503_v43  ;;  %v409_v54 = vrot.slane %v408_v49, 2  ;;  %1565 = vmatpush3.bf16.msra.mxu1 %v1564_v59  ;;  %v1578_v26 = vpack.c.bf16 %v1295_v20, %v1294_v13  ;;  %v1584_v48 = vpack.c.bf16 %v1281_v19, %v1280_v18 }
  0x91   :  { %1255 = vmatprep.subr.bf16.mxu0 %v1747_v57  ;;  %v505_v29 = vsel %vm473_vm3, %v304_v27, %v504_v55  ;;  %1567 = vmatprep.subr.bf16.mxu1 %v1566_v45  ;;  %v653_v36 = vlaneseq }
  0x92   :  { %v410_v42 = vadd.f32 %v409_v54, %v408_v49  ;;  %v506_v57 = vsel %vm475_vm4, %v340_v60, %v505_v29 }
  0x93   :  { %v507_v1 = vsel %vm477_vm5, %v376_v37, %v506_v57  ;;  %v654_v27 = vshrl.u32 %v653_v36, 7  ;;  %v1521_v57 = vld [vmem:[%s2288_s5] ss:$0 sm:$0xff]  ;;  %s1415_s5 = sshll.u32 %s1804_s4, 4  ;;  %s1416_s5 = int_to_ptr.vmem [resolvable:$true] %s1415_s5 }
  0x94   :  { %1256 = vmatpush1.bf16.msra.mxu0 %v1745_v25  ;;  %v411_v62 = vrot.slane %v410_v42, 1  ;;  %1569 = vmatpush3.bf16.msra.mxu1 %v1568_v8  ;;  %v1572_v25 = vpack.c.bf16 %v1275_v56, %v1274_v3  ;;  %v1803_v8 = vmov 0   ;;  %s1774_s28 = scalar_lea.vmem %s1416_s5, 128  ;;  %p1779_p9 = scmp.lt.s32.totalorder %s1416_s5, %s1416_s5 }
  0x95   :  { %1571 = vmatprep.subr.bf16.mxu1 %v1570_v2  ;;  %v655_v43 = vsub.s32 0, %v654_v27  ;;  %v659_v47 = vsub.s32 1, %v654_v27  ;;  %1603 = vset.pattern.permute.xlu0 %v1803_v8  ;;  %p1775_p8 = scmp.ne.s32.totalorder %s1416_s5, %s1774_s28  ;;  %p1780_p10 = scmp.lt.s32.totalorder %s1774_s28, %s1774_s28 }
  0x96   :  { %v412_v5 = vadd.f32 %v411_v62, %v410_v42 }
  0x97   :  { %v656_v32 = vrot.slane %v651_v46, %v655_v43  ;;  %v660_v49 = vrot.slane %v651_v46, %v659_v47  ;;  %p1781_p11 = por %p1780_p10, %p1779_p9 }
  0x98   :  { %v508_v10 = vsel %vm479_vm6, %v412_v5, %v507_v1  ;;  %1573 = vmatpush3.bf16.msra.mxu1 %v1572_v25  ;;  %v1522_v1 = vld [vmem:[#allocation3] ss:$0 sm:$0xff] }
  0x99   :  { %v547_v0 = vmul.f32 0.125, %v508_v10  ;;  %1575 = vmatprep.subr.bf16.mxu1 %v1574_v11  ;;  %p1782_p12 = pnand %p1781_p11, %p1775_p8 }
  0x9b   :  { %v553_v35 = vpack.c.bf16 %v547_v0, %v547_v0 }
  0x9c   :  { %1577 = vmatpush3.bf16.msra.mxu1 %v1576_v12 }
  0x9d   :  { %1258 = vmatmul.mubr.bf16.vlgmr.msra.gmra.mrb[0].mxu0 %v553_v35  ;;  %1579 = vmatprep.subr.bf16.mxu1 %v1578_v26 }
  0xa0   :  { %1581 = vmatpush3.bf16.msra.mxu1 %v1580_v21 }
  0xa1   :  { %1583 = vmatprep.subr.bf16.mxu1 %v1582_v41 }
  0xa4   :  { %1585 = vmatpush3.bf16.msra.mxu1 %v1584_v48 }
  0xa5   :  { %1587 = vmatprep.subr.bf16.mxu1 %v1586_v28 }
  0xa8   :  { %1589 = vmatpush3.bf16.msra.mxu1 %v1588_v17 }
 0x14f   :  { %v1177_v23 = vpop.f32.mrb[0].mxu1 }
 0x150   :  { %v1179_v24 = vpop.f32.mrb[1].mxu1  ;;  %v1178_v51 = vadd.f32 %v1177_v23, %v656_v32 }
 0x151   :  { %v1181_v34 = vpop.f32.mrb[2].mxu1  ;;  %v1180_v52 = vadd.f32 %v1179_v24, %v660_v49 }
 0x152   :  { %v1182_v33 = vpop.f32.mrb[3].mxu1 }
 0x170   :  { %v1259_v53 = vpop.f32.mrb[0].mxu0 }
 0x171   :  { %v1591_v55 = vadd.f32 %v1259_v53, %v1178_v51  ;;  %v1261_v58 = vpop.f32.mrb[1].mxu0 }
 0x172   :  { %v1593_v59 = vadd.f32 %v1261_v58, %v1180_v52  ;;  %v1263_v60 = vpop.f32.mrb[2].mxu0 }
 0x173   :  { %v1264_v61 = vpop.f32.mrb[3].mxu0  ;;  %v1266_v29 = vmax.f32 %v1591_v55, 0.0 }
 0x174   :  { %v1267_v54 = vmax.f32 %v1593_v59, 0.0 }
 0x176   :  { %1371 = vmatprep.mubr.f32.mxu1 %v1267_v54 }
 0x177   :  { %1372 = vmatmul.mubr.f32.vlgmr.msra.gmra.mrb[4].mxu1 %v1266_v29 }
 0x24a   :  { %v1555_v45 = vpop.f32.mrb[4].mxu1 }
 0x24b   :  { %v1556_v50 = vpop.f32.mrb[5].mxu1 }
 0x24c   :  { %v1557_v37 = vadd.f32 %v1556_v50, %v1555_v45 }
 0x24e   :  { %v1374_v42 = vadd.f32 %v1557_v37, %v1520_v30 }
 0x250   :  { %v1377_v39 = vmax.f32 %v1374_v42, 0.0 }
 0x252   :  { %v1385_v63 = vmul.f32 %v1521_v57, %v1377_v39 }
 0x254   :  { %v1387_v62 = vsel %vm1386_vm7, %v1385_v63, 0.0 }
 0x255   :  { %1388 = vadd.xlane.f32.xlu0 %v1387_v62 }
 0x2e2   :  { %v1389_v2 = vpop.xlane.xlu0 %1388 }
 0x2e3   :  { %v1397_v3 = vadd.f32 %v1522_v1, %v1389_v2 }
 0x2e5   :  { %v1398_v56 = vsub.f32 0.0, %v1397_v3 }
 0x2e7   :  { %v1399_v5 = vmul.f32 1.442695, %v1398_v56 }
 0x2e9   :  { %1748 = vpow2.f32 %v1399_v5 }
 0x2f3   :  { %v1749_v6 = vpop.eup %1748 }
 0x2f4   :  { %v1401_v7 = vadd.f32 1.0, %v1749_v6 }
 0x2f6   :  { %1750 = vrcp.f32 %v1401_v7 }
 0x300   :  { %v1751_v10 = vpop.eup %1750 }
 0x301   :  { %1405 = vperm.xlu0 %1603, %v1751_v10  }
 0x380   :  { %v1406_v25 = vpop.permute.xlu0 %1405 }
 0x381   :  { %1408 = vst [vmem:[#allocation7] sm:$0xff] %v1406_v25 }
 0x382   :  { %1785 = shalt.err (!%p1782_p12)
}
 0x383   :  { %s1786_s8 = scalar_lea.hbm %s2290_s7, 128 }
 0x384   :  { %p1787_p13 = scmp.ne.s32.totalorder %s2290_s7, %s1786_s8  ;;  %p1790_p0 = scmp.lt.u32.totalorder %s1786_s8, %s2290_s7 }
 0x386   :  { %p1792_p1 = pnand %p1790_p0, %p1787_p13 }
 0x388   :  { %1795 = shalt.err (!%p1792_p1)
}
 0x389   :  { %1418 = dma.vmem_to_hbm [thread:$0]  %s1416_s5, 128, %s2290_s7, [#allocation6]  }
 0x38a   :  { %1798 = dma.done.wait [#allocation6], 128  }
 0x38b   :  { %1799 = vsyncadd [#allocation6], 4294967168 }
 0x38c   :  { %1422 = vsyncpa [#allocation5], 1 }
 0x38d   :  { %1423 = vsyncpa [#allocation6], 1 }

</bundles_post_ra>
